<compile_context>
chip_gen: v6e
topology: v6e:2x2x1
jax: 0.10.0
libtpu: 0.0.40
codegen_flags: <defaults>
</compile_context>

<pallas_src>
import functools

import jax
import jax.numpy as jnp
from jax import lax
from jax.experimental import pallas as pl
from jax.experimental.pallas import tpu as pltpu

# ----------------------------- module hyper-params ---------------------------
B             = 16     # batch
INPUT_DIM     = 64     # input_dim
OUTPUT_DIM    = 32     # output_dim
N_TASKS       = 4      # n_tasks
VIRTUAL_BATCH = 8      # GBN virtual_batch_size  -> 2 ghost chunks of 8 rows
D_BN          = True   # d_bn
BN_EPS        = 1e-5   # nn.BatchNorm1d default eps


# ======================= fused Linear + GhostBN + Tanh =======================
def _feature_reader_kernel(x_ref, w_ref, b_ref, g_ref, beta_ref, o_ref, *,
                           n_tasks, output_dim, eps, d_bn):
    # fc: (vb, in_dim) @ (in_dim, n_tasks*output_dim) + bias  -> lane-dense (vb, N)
    y = jnp.dot(x_ref[...], w_ref[...], preferred_element_type=jnp.float32) + b_ref[...]

    if d_bn:
        vb = y.shape[0]
        # flat column j = task * output_dim + channel  (from x.view(B, n_tasks, -1))
        # BatchNorm1d(output_dim) on the transposed tensor == per-channel stats
        # over (virtual batch rows x tasks).  Use static lane slices per task.
        parts = [y[:, t * output_dim:(t + 1) * output_dim] for t in range(n_tasks)]

        # mean per channel over rows and tasks
        mu = jnp.mean(sum(parts), axis=0, keepdims=True) / n_tasks            # (1, O)
        # biased variance per channel (PyTorch normalizes with 1/N in forward)
        var = sum(jnp.mean(jnp.square(p - mu), axis=0, keepdims=True)
                  for p in parts) / n_tasks                                   # (1, O)
        inv = lax.rsqrt(var + eps)

        gamma = g_ref[...]
        beta = beta_ref[...]
        outs = [jnp.tanh((p - mu) * inv * gamma + beta) for p in parts]
        o_ref[...] = jnp.concatenate(outs, axis=-1).astype(o_ref.dtype)       # (vb, N)
    else:
        o_ref[...] = jnp.tanh(y).astype(o_ref.dtype)


def feature_reader_initial_forward(x, w, b, gamma, beta, *,
                                   n_tasks=N_TASKS, output_dim=OUTPUT_DIM,
                                   virtual_batch_size=VIRTUAL_BATCH,
                                   d_bn=D_BN, eps=BN_EPS):
    """x:(B,in)  w:(in, n_tasks*output_dim)  b:(1,N)  gamma/beta:(1,output_dim)."""
    Bsz, in_dim = x.shape
    N = n_tasks * output_dim
    vb = min(virtual_batch_size, Bsz)
    # TODO(synk): uneven last ghost chunk (torch.chunk with B % vb != 0) not handled.
    assert Bsz % vb == 0, "batch must be divisible by the virtual batch size"
    num_chunks = Bsz // vb

    out = pl.pallas_call(
        functools.partial(_feature_reader_kernel, n_tasks=n_tasks,
                          output_dim=output_dim, eps=eps, d_bn=d_bn),
        out_shape=jax.ShapeDtypeStruct((Bsz, N), jnp.float32),
        grid_spec=pltpu.PrefetchScalarGridSpec(
            num_scalar_prefetch=0,
            grid=(num_chunks,),
            in_specs=[
                pl.BlockSpec((vb, in_dim), lambda i: (i, 0)),        # x chunk
                pl.BlockSpec((in_dim, N), lambda i: (0, 0)),         # fc weight (resident)
                pl.BlockSpec((1, N), lambda i: (0, 0)),              # fc bias
                pl.BlockSpec((1, output_dim), lambda i: (0, 0)),     # BN gamma
                pl.BlockSpec((1, output_dim), lambda i: (0, 0)),     # BN beta
            ],
            out_specs=pl.BlockSpec((vb, N), lambda i: (i, 0)),
        ),
        compiler_params=pltpu.CompilerParams(dimension_semantics=("parallel",)),
    )(x, w, b, gamma, beta)
    # (B, n_tasks*output_dim) -> (B, n_tasks, output_dim): contiguous row-major view.
    return out.reshape(Bsz, n_tasks, output_dim)


# ============================ pure-JAX reference ==============================
def _reference_forward(x, w, b, gamma, beta, *, n_tasks, output_dim,
                       virtual_batch_size, d_bn, eps):
    Bsz = x.shape[0]
    y = x @ w + b
    y = y.reshape(Bsz, n_tasks, output_dim)
    if d_bn:
        yt = jnp.transpose(y, (0, 2, 1))                    # (B, output_dim, n_tasks)
        vb = min(virtual_batch_size, Bsz)
        chunks = []
        for s in range(0, Bsz, vb):
            c = yt[s:s + vb]
            mu = jnp.mean(c, axis=(0, 2), keepdims=True)
            var = jnp.mean(jnp.square(c - mu), axis=(0, 2), keepdims=True)
            c = (c - mu) * lax.rsqrt(var + eps)
            c = c * gamma.reshape(1, -1, 1) + beta.reshape(1, -1, 1)
            chunks.append(c)
        y = jnp.transpose(jnp.concatenate(chunks, axis=0), (0, 2, 1))
    return jnp.tanh(y)


# ============================== parameter init ================================
def init_params(key):
    k_w, k_b = jax.random.split(key)
    bound = 1.0 / (INPUT_DIM ** 0.5)                        # nn.Linear default init
    # fc weight stored pre-transposed: (input_dim, n_tasks*output_dim)
    w = jax.random.uniform(k_w, (INPUT_DIM, N_TASKS * OUTPUT_DIM),
                           jnp.float32, -bound, bound)
    b = jax.random.uniform(k_b, (1, N_TASKS * OUTPUT_DIM),
                           jnp.float32, -bound, bound)
    gamma = jnp.ones((1, OUTPUT_DIM), jnp.float32)          # BatchNorm1d default affine
    beta = jnp.zeros((1, OUTPUT_DIM), jnp.float32)
    return dict(w=w, b=b, gamma=gamma, beta=beta)


# ==================================== main ====================================
if __name__ == "__main__":
    root = jax.random.PRNGKey(0)
    k_param, k_x = jax.random.split(root)

    params = init_params(k_param)
    x = jax.random.normal(k_x, (B, INPUT_DIM), jnp.float32)

    fwd = jax.jit(lambda x_, w_, b_, g_, be_: feature_reader_initial_forward(
        x_, w_, b_, g_, be_))
    out = fwd(x, params["w"], params["b"], params["gamma"], params["beta"])
    jax.block_until_ready(out)

    ref = _reference_forward(x, params["w"], params["b"], params["gamma"],
                             params["beta"], n_tasks=N_TASKS,
                             output_dim=OUTPUT_DIM,
                             virtual_batch_size=VIRTUAL_BATCH,
                             d_bn=D_BN, eps=BN_EPS)

    assert out.shape == (B, N_TASKS, OUTPUT_DIM)
    assert bool(jnp.all(jnp.isfinite(out)))
    assert bool(jnp.allclose(out, ref, atol=2e-5, rtol=2e-5)), (
        float(jnp.max(jnp.abs(out - ref))))
    print("KERNEL_OK")
</pallas_src>

<mosaic_0001>
module attributes {stable_mosaic.version = 11 : i64} {
  func.func @_feature_reader_kernel(%arg0: i32, %arg1: memref<8x64xf32, #tpu.memory_space<vmem>>, %arg2: memref<64x128xf32, #tpu.memory_space<vmem>>, %arg3: memref<1x128xf32, #tpu.memory_space<vmem>>, %arg4: memref<1x32xf32, #tpu.memory_space<vmem>>, %arg5: memref<1x32xf32, #tpu.memory_space<vmem>>, %arg6: memref<8x128xf32, #tpu.memory_space<vmem>>) attributes {dimension_semantics = [#tpu.dimension_semantics<parallel>], iteration_bounds = array<i64: 2>, scalar_prefetch = 0 : i64, scratch_operands = 0 : i64, tpu.core_type = #tpu.core_type<tc>, window_params = [{transform_indices = @transform_0, window_bounds = array<i64: 8, 64>}, {pipeline_mode = #tpu.pipeline_mode<synchronous>, transform_indices = @transform_1, window_bounds = array<i64: 64, 128>}, {pipeline_mode = #tpu.pipeline_mode<synchronous>, transform_indices = @transform_2, window_bounds = array<i64: 1, 128>}, {pipeline_mode = #tpu.pipeline_mode<synchronous>, transform_indices = @transform_3, window_bounds = array<i64: 1, 32>}, {pipeline_mode = #tpu.pipeline_mode<synchronous>, transform_indices = @transform_4, window_bounds = array<i64: 1, 32>}, {transform_indices = @transform_5, window_bounds = array<i64: 8, 128>}]} {
    %c0 = arith.constant 0 : index
    %c0_0 = arith.constant 0 : index
    %0 = vector.load %arg1[%c0, %c0_0] : memref<8x64xf32, #tpu.memory_space<vmem>>, vector<8x64xf32>
    %c0_1 = arith.constant 0 : index
    %c0_2 = arith.constant 0 : index
    %1 = vector.load %arg2[%c0_1, %c0_2] : memref<64x128xf32, #tpu.memory_space<vmem>>, vector<64x128xf32>
    %cst = arith.constant dense<0.000000e+00> : vector<8x128xf32>
    %2 = tpu.matmul %0, %1, %cst {dimension_numbers = #tpu.dot_dimension_numbers<[1], [0], [0], [1], [0, 0, 1, 1], [], []>} : vector<8x64xf32>, vector<64x128xf32>, vector<8x128xf32> -> vector<8x128xf32>
    %c0_3 = arith.constant 0 : index
    %c0_4 = arith.constant 0 : index
    %3 = vector.load %arg3[%c0_3, %c0_4] : memref<1x128xf32, #tpu.memory_space<vmem>>, vector<1x128xf32>
    %4 = vector.broadcast %3 : vector<1x128xf32> to vector<8x128xf32>
    %5 = arith.addf %2, %4 : vector<8x128xf32>
    %6 = vector.extract_strided_slice %5 {offsets = [0, 0], sizes = [8, 32], strides = [1, 1]} : vector<8x128xf32> to vector<8x32xf32>
    %7 = vector.extract_strided_slice %5 {offsets = [0, 32], sizes = [8, 32], strides = [1, 1]} : vector<8x128xf32> to vector<8x32xf32>
    %8 = vector.extract_strided_slice %5 {offsets = [0, 64], sizes = [8, 32], strides = [1, 1]} : vector<8x128xf32> to vector<8x32xf32>
    %9 = vector.extract_strided_slice %5 {offsets = [0, 96], sizes = [8, 32], strides = [1, 1]} : vector<8x128xf32> to vector<8x32xf32>
    %cst_5 = arith.constant 0.000000e+00 : f32
    %10 = vector.broadcast %cst_5 : f32 to vector<8x32xf32>
    %11 = arith.addf %10, %6 : vector<8x32xf32>
    %12 = arith.addf %11, %7 : vector<8x32xf32>
    %13 = arith.addf %12, %8 : vector<8x32xf32>
    %14 = arith.addf %13, %9 : vector<8x32xf32>
    %cst_6 = arith.constant dense<0.000000e+00> : vector<32xf32>
    %15 = vector.multi_reduction <add>, %14, %cst_6 [0] : vector<8x32xf32> to vector<32xf32>
    %16 = vector.shape_cast %15 : vector<32xf32> to vector<1x32xf32>
    %cst_7 = arith.constant 8.000000e+00 : f32
    %17 = vector.broadcast %cst_7 : f32 to vector<1x32xf32>
    %18 = arith.divf %16, %17 : vector<1x32xf32>
    %cst_8 = arith.constant 4.000000e+00 : f32
    %19 = vector.broadcast %cst_8 : f32 to vector<1x32xf32>
    %20 = arith.divf %18, %19 : vector<1x32xf32>
    %21 = vector.broadcast %20 : vector<1x32xf32> to vector<8x32xf32>
    %22 = arith.subf %6, %21 : vector<8x32xf32>
    %23 = arith.mulf %22, %22 : vector<8x32xf32>
    %cst_9 = arith.constant dense<0.000000e+00> : vector<32xf32>
    %24 = vector.multi_reduction <add>, %23, %cst_9 [0] : vector<8x32xf32> to vector<32xf32>
    %25 = vector.shape_cast %24 : vector<32xf32> to vector<1x32xf32>
    %cst_10 = arith.constant 8.000000e+00 : f32
    %26 = vector.broadcast %cst_10 : f32 to vector<1x32xf32>
    %27 = arith.divf %25, %26 : vector<1x32xf32>
    %cst_11 = arith.constant 0.000000e+00 : f32
    %28 = vector.broadcast %cst_11 : f32 to vector<1x32xf32>
    %29 = arith.addf %28, %27 : vector<1x32xf32>
    %30 = vector.broadcast %20 : vector<1x32xf32> to vector<8x32xf32>
    %31 = arith.subf %7, %30 : vector<8x32xf32>
    %32 = arith.mulf %31, %31 : vector<8x32xf32>
    %cst_12 = arith.constant dense<0.000000e+00> : vector<32xf32>
    %33 = vector.multi_reduction <add>, %32, %cst_12 [0] : vector<8x32xf32> to vector<32xf32>
    %34 = vector.shape_cast %33 : vector<32xf32> to vector<1x32xf32>
    %cst_13 = arith.constant 8.000000e+00 : f32
    %35 = vector.broadcast %cst_13 : f32 to vector<1x32xf32>
    %36 = arith.divf %34, %35 : vector<1x32xf32>
    %37 = arith.addf %29, %36 : vector<1x32xf32>
    %38 = vector.broadcast %20 : vector<1x32xf32> to vector<8x32xf32>
    %39 = arith.subf %8, %38 : vector<8x32xf32>
    %40 = arith.mulf %39, %39 : vector<8x32xf32>
    %cst_14 = arith.constant dense<0.000000e+00> : vector<32xf32>
    %41 = vector.multi_reduction <add>, %40, %cst_14 [0] : vector<8x32xf32> to vector<32xf32>
    %42 = vector.shape_cast %41 : vector<32xf32> to vector<1x32xf32>
    %cst_15 = arith.constant 8.000000e+00 : f32
    %43 = vector.broadcast %cst_15 : f32 to vector<1x32xf32>
    %44 = arith.divf %42, %43 : vector<1x32xf32>
    %45 = arith.addf %37, %44 : vector<1x32xf32>
    %46 = vector.broadcast %20 : vector<1x32xf32> to vector<8x32xf32>
    %47 = arith.subf %9, %46 : vector<8x32xf32>
    %48 = arith.mulf %47, %47 : vector<8x32xf32>
    %cst_16 = arith.constant dense<0.000000e+00> : vector<32xf32>
    %49 = vector.multi_reduction <add>, %48, %cst_16 [0] : vector<8x32xf32> to vector<32xf32>
    %50 = vector.shape_cast %49 : vector<32xf32> to vector<1x32xf32>
    %cst_17 = arith.constant 8.000000e+00 : f32
    %51 = vector.broadcast %cst_17 : f32 to vector<1x32xf32>
    %52 = arith.divf %50, %51 : vector<1x32xf32>
    %53 = arith.addf %45, %52 : vector<1x32xf32>
    %cst_18 = arith.constant 4.000000e+00 : f32
    %54 = vector.broadcast %cst_18 : f32 to vector<1x32xf32>
    %55 = arith.divf %53, %54 : vector<1x32xf32>
    %cst_19 = arith.constant 9.99999974E-6 : f32
    %56 = vector.broadcast %cst_19 : f32 to vector<1x32xf32>
    %57 = arith.addf %55, %56 : vector<1x32xf32>
    %58 = math.rsqrt %57 : vector<1x32xf32>
    %c0_20 = arith.constant 0 : index
    %c0_21 = arith.constant 0 : index
    %59 = vector.load %arg4[%c0_20, %c0_21] : memref<1x32xf32, #tpu.memory_space<vmem>>, vector<1x32xf32>
    %c0_22 = arith.constant 0 : index
    %c0_23 = arith.constant 0 : index
    %60 = vector.load %arg5[%c0_22, %c0_23] : memref<1x32xf32, #tpu.memory_space<vmem>>, vector<1x32xf32>
    %61 = vector.broadcast %20 : vector<1x32xf32> to vector<8x32xf32>
    %62 = arith.subf %6, %61 : vector<8x32xf32>
    %63 = vector.broadcast %58 : vector<1x32xf32> to vector<8x32xf32>
    %64 = arith.mulf %62, %63 : vector<8x32xf32>
    %65 = vector.broadcast %59 : vector<1x32xf32> to vector<8x32xf32>
    %66 = arith.mulf %64, %65 : vector<8x32xf32>
    %67 = vector.broadcast %60 : vector<1x32xf32> to vector<8x32xf32>
    %68 = arith.addf %66, %67 : vector<8x32xf32>
    %69 = math.tanh %68 : vector<8x32xf32>
    %70 = vector.broadcast %20 : vector<1x32xf32> to vector<8x32xf32>
    %71 = arith.subf %7, %70 : vector<8x32xf32>
    %72 = vector.broadcast %58 : vector<1x32xf32> to vector<8x32xf32>
    %73 = arith.mulf %71, %72 : vector<8x32xf32>
    %74 = vector.broadcast %59 : vector<1x32xf32> to vector<8x32xf32>
    %75 = arith.mulf %73, %74 : vector<8x32xf32>
    %76 = vector.broadcast %60 : vector<1x32xf32> to vector<8x32xf32>
    %77 = arith.addf %75, %76 : vector<8x32xf32>
    %78 = math.tanh %77 : vector<8x32xf32>
    %79 = vector.broadcast %20 : vector<1x32xf32> to vector<8x32xf32>
    %80 = arith.subf %8, %79 : vector<8x32xf32>
    %81 = vector.broadcast %58 : vector<1x32xf32> to vector<8x32xf32>
    %82 = arith.mulf %80, %81 : vector<8x32xf32>
    %83 = vector.broadcast %59 : vector<1x32xf32> to vector<8x32xf32>
    %84 = arith.mulf %82, %83 : vector<8x32xf32>
    %85 = vector.broadcast %60 : vector<1x32xf32> to vector<8x32xf32>
    %86 = arith.addf %84, %85 : vector<8x32xf32>
    %87 = math.tanh %86 : vector<8x32xf32>
    %88 = vector.broadcast %20 : vector<1x32xf32> to vector<8x32xf32>
    %89 = arith.subf %9, %88 : vector<8x32xf32>
    %90 = vector.broadcast %58 : vector<1x32xf32> to vector<8x32xf32>
    %91 = arith.mulf %89, %90 : vector<8x32xf32>
    %92 = vector.broadcast %59 : vector<1x32xf32> to vector<8x32xf32>
    %93 = arith.mulf %91, %92 : vector<8x32xf32>
    %94 = vector.broadcast %60 : vector<1x32xf32> to vector<8x32xf32>
    %95 = arith.addf %93, %94 : vector<8x32xf32>
    %96 = math.tanh %95 : vector<8x32xf32>
    %97 = tpu.concatenate %69, %78, %87, %96 in 1 : vector<8x32xf32>, vector<8x32xf32>, vector<8x32xf32>, vector<8x32xf32> -> vector<8x128xf32>
    %c0_24 = arith.constant 0 : index
    %c0_25 = arith.constant 0 : index
    %98 = vector.load %arg6[%c0_24, %c0_25] : memref<8x128xf32, #tpu.memory_space<vmem>>, vector<8x128xf32>
    tpu.vector_store %arg6[%c0_24, %c0_25], %97 {strides = array<i32>} : memref<8x128xf32, #tpu.memory_space<vmem>>, vector<8x128xf32>,
    return
  }
  func.func @transform_0(%arg0: i32) -> (i32, i32) {
    %c0_i32 = arith.constant 0 : i32
    %c0_i32_0 = arith.constant 0 : i32
    return %arg0, %c0_i32 : i32, i32
  }
  func.func @transform_1(%arg0: i32) -> (i32, i32) {
    %c0_i32 = arith.constant 0 : i32
    %c0_i32_0 = arith.constant 0 : i32
    %c0_i32_1 = arith.constant 0 : i32
    return %c0_i32, %c0_i32_0 : i32, i32
  }
  func.func @transform_2(%arg0: i32) -> (i32, i32) {
    %c0_i32 = arith.constant 0 : i32
    %c0_i32_0 = arith.constant 0 : i32
    %c0_i32_1 = arith.constant 0 : i32
    return %c0_i32, %c0_i32_0 : i32, i32
  }
  func.func @transform_3(%arg0: i32) -> (i32, i32) {
    %c0_i32 = arith.constant 0 : i32
    %c0_i32_0 = arith.constant 0 : i32
    %c0_i32_1 = arith.constant 0 : i32
    return %c0_i32, %c0_i32_0 : i32, i32
  }
  func.func @transform_4(%arg0: i32) -> (i32, i32) {
    %c0_i32 = arith.constant 0 : i32
    %c0_i32_0 = arith.constant 0 : i32
    %c0_i32_1 = arith.constant 0 : i32
    return %c0_i32, %c0_i32_0 : i32, i32
  }
  func.func @transform_5(%arg0: i32) -> (i32, i32) {
    %c0_i32 = arith.constant 0 : i32
    %c0_i32_0 = arith.constant 0 : i32
    return %arg0, %c0_i32 : i32, i32
  }
}

</mosaic_0001>

<bundles_post_ra>
// kernel: _lambda_.1
= control target key start
LH: loop header
LB: loop body
LE: loop exit
PB: predicated region body
PF: predicated region fallthrough
CT: control target
= control target key end

     0   :  { %10 = vsyncpa [#allocation3], 0  ;;  %s1006_s0 = inlined_call_operand.hbm [shape: f32[16,64], index: 0, kind: input, shape index: {}]   ;;  %s1007_s1 = inlined_call_operand.hbm [shape: f32[64,128], index: 1, kind: input, shape index: {}]   ;;  %s1008_s2 = inlined_call_operand.vmem [shape: f32[1,128], index: 2, kind: input, shape index: {}]   ;;  %s1009_s3 = inlined_call_operand.vmem [shape: f32[1,32], index: 3, kind: input, shape index: {}]   ;;  %s1010_s4 = inlined_call_operand.vmem [shape: f32[1,32], index: 4, kind: input, shape index: {}]   ;;  %s1011_s5 = inlined_call_operand.vmem [shape: f32[16,128], index: 5, kind: output, shape index: {}]  }
   0x1   :  { %12 = vsyncpa [#allocation3 + $0x1], 0 }
   0x2   :  { %13 = vsyncpa [#allocation5], 0  ;;  %s829_s18 = smov 0   ;;  %s831_s19 = smov 0  }
   0x3   :  { %s833_s20 = smov 0   ;;  %s835_s21 = smov 0  }
   0x4 LB: > { %s848_s22 = sadd.s32 4294967295, %s788_s21   ;;  %p39_p0 = scmp.ne.s32.totalorder %s780_s19, %s776_s18  ;;  %s788_s21 = sphi %s835_s21, %s1026_s21   ;;  %s784_s20 = sphi %s833_s20, %s1025_s20   ;;  %s780_s19 = sphi %s831_s19, %s1024_s19   ;;  %s776_s18 = sphi %s829_s18, %s1023_s18  }
   0x5   : > { %p1012_p1 = scmp.eq.s32.totalorder %s848_s22, 0  ;;  %p586_p2 = scmp.ge.s32.totalorder %s788_s21, 1 }
   0x6   : > { %p160_p3 = scmp.lt.s32.totalorder %s788_s21, 3  ;;  %s790_s25 = smov [#allocation4]  }
   0x7   : > { %p856_p4 = por %p1012_p1, %p39_p0  ;;  %s172_s26 = sshll.u32 %s790_s25, 4  ;;  %s173_s26 = int_to_ptr.vmem [resolvable:$true] %s172_s26 }
   0x8   : > { %p860_p5 = pnand %p586_p2, %p160_p3  ;;  %s873_s28 = sadd.s32 1, %s788_s21  }
   0x9   : > { %s1015_s23 = scalar_select %p856_p4, 1, 0 }
   0xa   : > { %s1016_s24 = scalar_select %p860_p5, 1, 0 }
   0xb   : > { %p635_p6 = pneg %p860_p5  ;;  %s26_s29 = sadd.s32 1, %s784_s20 }
   0xc   : > { %s23_s30 = ssub.s32 %s788_s21, %s873_s28  ;;  %s707_s6 = scalar_lea.vmem %s173_s26, 1024 }
   0xd   : > { %p868_p7 = pnand %p635_p6, %p1012_p1  ;;  %p708_p9 = scmp.ne.s32.totalorder %s173_s26, %s707_s6 }
   0xe   : > { %p715_p12 = scmp.lt.s32.totalorder %s173_s26, %s173_s26  ;;  %p716_p13 = scmp.lt.s32.totalorder %s707_s6, %s707_s6 }
   0xf   : > { %p698_p8 = pneg %p868_p7 }
  0x10   : > { %p717_p0 = por %p716_p13, %p715_p12 }
  0x11   : > { %p710_p10 = pnand %p708_p9, %p698_p8 }
  0x13   : > { %p711_p11 = pneg %p710_p10 }
  0x15   : > { %p718_p2 = pnand %p717_p0, %p711_p11 }
  0x17   : > { %721 = shalt.err (!%p718_p2)
}
  0x18   : > { %s791_s7 = smov 128   ;;  %s792_s8 = smov 8  }
  0x19   : > { %638 = dma.hbm_to_vmem [thread:$0]  (!%p868_p7), %s1007_s1, 1024, %s173_s26, [#allocation5], %s791_s7, %s791_s7, %s792_s8  }
  0x1a   : > { %p24_p3 = scmp.eq.s32.totalorder %s23_s30, 0  ;;  %p33_p6 = scmp.ne.s32.totalorder %s784_s20, %s780_s19 }
  0x1b   : > { %p34_p8 = scmp.eq.s32.totalorder %s788_s21, 0  ;;  %p644_p9 = scmp.lt.s32.totalorder %s788_s21, 2 }
  0x1c   : > { %s890_s11 = scalar_select %p24_p3, %s784_s20, %s26_s29  }
  0x1d   : > { %p35_p10 = por %p34_p8, %p33_p6  ;;  %s195_s12 = sand.u32 1, %s784_s20  }
  0x1e   : > { %s589_s13 = sshll.u32 %s195_s12, 3  ;;  %s590_s14 = sshll.u32 %s788_s21, 7 }
  0x1f   : > { %s897_s17 = scalar_lea.hbm %s1006_s0, %s590_s14  ;;  %s199_s18 = scalar_lea.vmem [#allocation2], %s589_s13 }
  0x20   : > { %s206_s25 = sshll.u32 %s199_s18, 4  ;;  %p899_p7 = pnand %p644_p9, %p35_p10  ;;  %s207_s25 = int_to_ptr.vmem [resolvable:$true] %s206_s25 }
  0x21   : > { %s196_s27 = scalar_lea.sflag [#allocation3], %s195_s12  ;;  %s722_s29 = scalar_lea.hbm %s897_s17, 128 }
  0x22   : > { %p723_p11 = scmp.ne.s32.totalorder %s897_s17, %s722_s29  ;;  %p724_p12 = pneg %p899_p7 }
  0x23   : > { %s727_s6 = scalar_lea.hbm %s1006_s0, 256  ;;  %p728_p2 = scmp.lt.s32.totalorder %s897_s17, %s1006_s0 }
  0x24   : > { %p725_p13 = pnand %p724_p12, %p723_p11  ;;  %p729_p3 = scmp.lt.s32.totalorder %s727_s6, %s722_s29 }
  0x26   : > { %p726_p0 = pneg %p725_p13  ;;  %p730_p6 = por %p729_p3, %p728_p2 }
  0x28   : > { %p731_p8 = pnand %p730_p6, %p726_p0 }
  0x2a   : > { %734 = shalt.err (!%p731_p8)
}
  0x2b   : > { %s735_s9 = scalar_lea.vmem %s207_s25, 128  ;;  %s793_s10 = smov [#allocation2]  }
  0x2c   : > { %p736_p9 = scmp.ne.s32.totalorder %s207_s25, %s735_s9  ;;  %s740_s12 = sshll.u32 %s793_s10, 4  ;;  %s741_s12 = int_to_ptr.vmem [resolvable:$false] %s740_s12 }
  0x2d   : > { %s742_s13 = scalar_lea.vmem %s741_s12, 256  ;;  %p743_p11 = scmp.lt.s32.totalorder %s207_s25, %s741_s12 }
  0x2e   : > { %p738_p10 = pnand %p736_p9, %p724_p12  ;;  %p744_p13 = scmp.lt.s32.totalorder %s742_s13, %s735_s9 }
  0x30   : > { %p739_p1 = pneg %p738_p10  ;;  %p745_p4 = por %p744_p13, %p743_p11 }
  0x32   : > { %p746_p5 = pnand %p745_p4, %p739_p1 }
  0x34   : > { %749 = shalt.err (!%p746_p5)
}
  0x35   : > { %642 = dma.hbm_to_vmem [thread:$0]  (!%p899_p7), %s897_s17, 128, %s207_s25, %s196_s27  }
  0x36   : > { %p1019_p0 = scmp.ne.s32.totalorder %s1016_s24, 0 }
  0x37   : > { %s217_s14 = sand.u32 (!%p1019_p0), 1, %s780_s19   ;;  %p1020_p12 = scmp.ne.s32.totalorder (!%p1019_p0), %s1015_s23, 0 }
  0x38   : > { %215 = sbr.rel (%p1019_p0) target bundleno = 834 (0x342), region = 40  ;;  %s920_s15 = sshll.u32 (!%p1019_p0), %s217_s14, 3 }
  0x39   : > { %s218_s16 = scalar_lea.sflag (!%p1019_p0), [#allocation3], %s217_s14  ;;  %s221_s18 = scalar_lea.vmem (!%p1019_p0), [#allocation2], %s920_s15 }
  0x3d   : > { %767 = dma.done.wait (%p1020_p12), %s218_s16, 128  }
  0x3e   : > { %769 = vsyncadd (%p1020_p12), %s218_s16, 4294967168  ;;  %p1021_p1 = scmp.eq.s32.totalorder %s848_s22, 0 }
  0x40   : > { %771 = dma.done.wait (%p1021_p1), [#allocation5], 1024   ;;  %p1022_p4 = pmov %p1021_p1 }
  0x41   : > { %v794_v0 = vmov 0.0   ;;  %vm795_vm0 = vmmov 0   ;;  %v263_v1 = vld [vmem:[#allocation4 + $0x38] sm:$0xff]  ;;  %v262_v2 = vld [vmem:[#allocation4 + $0x30] sm:$0xff]  ;;  %v261_v3 = vld [vmem:[#allocation4 + $0x28] sm:$0xff]  ;;  %vm271_vm1 = vcmask 523264  }
  0x42   : > { %773 = vsyncadd (%p1022_p4), [#allocation5], 4294966272  ;;  %610 = vmatprep.subr.mxu0 %v794_v0  ;;  %626 = vmatprep.mubr.msk.f32.mxu0 %vm795_vm0, %v794_v0  ;;  %v260_v4 = vld [vmem:[#allocation4 + $0x20] sm:$0xff]  ;;  %v259_v5 = vld [vmem:[#allocation4 + $0x18] sm:$0xff]  ;;  %s796_s17 = smov 32   ;;  %s797_s25 = smov 96  }
  0x43   : > { %611 = vmatpush3.msra.mxu0 %v263_v1  ;;  %v258_v6 = vld [vmem:[#allocation4 + $0x10] sm:$0xff]  ;;  %v257_v7 = vld [vmem:[#allocation4 + $0x8] sm:$0xff]  ;;  %v256_v8 = vld [vmem:[#allocation4] sm:$0xff]  ;;  %s798_s26 = smov 64   ;;  %vm359_vm2 = vcmask 261120   ;;  %vm407_vm3 = vcmask 785920  }
  0x44   : > { %612 = vmatprep.subr.mxu0 %v794_v0  ;;  %v255_v9 = vld [vmem:[%s221_s18] sm:$0xff]  ;;  %vm388_vm4 = vcmask 523520   ;;  %vm426_vm5 = vcmask 1048320   ;;  %p251_p5 = scmp.lt.s32.totalorder %s848_s22, 1  ;;  %vm507_vm6 = vcmask 785408  }
  0x45   : > { %613 = vmatpush3.msra.mxu0 %v262_v2  ;;  %v595_v10 = vld [vmem:[%s1008_s2] ss:$0 sm:$0xff] }
  0x46   : > { %614 = vmatprep.subr.mxu0 %v794_v0  ;;  %v597_v62 = vld [vmem:[%s1009_s3] ss:$0 sm:$0xff]  ;;  %s1028_s22 = smov (!%p251_p5, %s848_s22), 1 }
  0x47   : > { %615 = vmatpush3.msra.mxu0 %v261_v3  ;;  %v598_v63 = vld [vmem:[%s1010_s4] ss:$0 sm:$0xff]  ;;  %s594_s6 = sshll.u32 %s1028_s22, 3 }
  0x48   : > { %616 = vmatprep.subr.mxu0 %v794_v0  ;;  %s254_s9 = scalar_lea.vmem %s1011_s5, %s594_s6 }
  0x49   : > { %617 = vmatpush3.msra.mxu0 %v260_v4 }
  0x4a   : > { %618 = vmatprep.subr.mxu0 %v794_v0 }
  0x4b   : > { %619 = vmatpush3.msra.mxu0 %v259_v5 }
  0x4c   : > { %620 = vmatprep.subr.mxu0 %v794_v0 }
  0x4d   : > { %621 = vmatpush3.msra.mxu0 %v258_v6 }
  0x4e   : > { %622 = vmatprep.subr.mxu0 %v794_v0 }
  0x4f   : > { %623 = vmatpush3.msra.mxu0 %v257_v7 }
  0x50   : > { %624 = vmatprep.subr.mxu0 %v794_v0 }
  0x51   : > { %625 = vmatpush3.msra.mxu0 %v256_v8 }
  0x52   : > { %627 = vmatmul.mubr.msk.f32.vlgmr.msra.gmra.mxu0 %vm271_vm1, %v255_v9 }
 0x112   : > { %v341_v11 = vpop.f32.mrf.mxu0 }
 0x113   : > { %v935_v12 = vadd.f32 %v595_v10, %v341_v11 }
 0x114   : > { %v628_v13 = vpop.f32.mrf.mxu0 }
 0x115   : > { %355 = vrot.lane.b32.xlu1 %v935_v12, %s796_s17  ;;  %347 = vrot.lane.b32.xlu0 %v935_v12, %s797_s25 }
 0x119   : > { %351 = vrot.lane.b32.xlu0 %v935_v12, %s798_s26 }
 0x187   : > { %v348_v14 = vpop.permute.xlu0 %347  ;;  %v356_v18 = vpop.permute.xlu1 %355 }
 0x188   : > { %v350_v15 = vadd.f32 %v348_v14, %v935_v12 }
 0x18b   : > { %v352_v16 = vpop.permute.xlu0 %351 }
 0x18c   : > { %v354_v17 = vadd.f32 %v352_v16, %v350_v15 }
 0x18e   : > { %v358_v19 = vadd.f32 %v356_v18, %v354_v17 }
 0x190   : > { %v360_v20 = vsel %vm359_vm2, %v358_v19, 0.0 }
 0x191   : > { %v361_v21 = vrot.slane %v360_v20, 4 }
 0x193   : > { %v362_v22 = vadd.f32 %v361_v21, %v360_v20 }
 0x195   : > { %v363_v23 = vrot.slane %v362_v22, 2 }
 0x197   : > { %v364_v24 = vadd.f32 %v363_v23, %v362_v22 }
 0x199   : > { %v365_v25 = vrot.slane %v364_v24, 1 }
 0x19b   : > { %v366_v26 = vadd.f32 %v365_v25, %v364_v24 }
 0x19d   : > { %v368_v27 = vmul.f32 0.125, %v366_v26 }
 0x19f   : > { %v370_v28 = vmul.f32 0.25, %v368_v27 }
 0x1a1   : > { %402 = vrot.lane.b32.xlu0 %v370_v28, %s798_s26  ;;  %383 = vrot.lane.b32.xlu1 %v370_v28, %s796_s17  ;;  %v371_v0 = vsub.f32 %v935_v12, %v370_v28 }
 0x1a3   : > { %v372_v1 = vmul.f32 %v371_v0, %v371_v0 }
 0x1a5   : > { %421 = vrot.lane.b32.xlu1 %v370_v28, %s797_s25  ;;  %v373_v2 = vsel %vm359_vm2, %v372_v1, 0.0 }
 0x1a6   : > { %v374_v3 = vrot.slane %v373_v2, 4 }
 0x1a8   : > { %v375_v4 = vadd.f32 %v374_v3, %v373_v2 }
 0x1aa   : > { %v376_v5 = vrot.slane %v375_v4, 2 }
 0x1ac   : > { %v377_v6 = vadd.f32 %v376_v5, %v375_v4 }
 0x1ae   : > { %v378_v7 = vrot.slane %v377_v6, 1 }
 0x1b0   : > { %v379_v8 = vadd.f32 %v378_v7, %v377_v6 }
 0x1b2   : > { %v380_v9 = vmul.f32 0.125, %v379_v8 }
 0x213   : > { %v403_v29 = vpop.permute.xlu0 %402  ;;  %v384_v30 = vpop.permute.xlu1 %383 }
 0x214   : > { %v949_v31 = vsub.f32 %v935_v12, %v403_v29  ;;  %v952_v32 = vsub.f32 %v935_v12, %v384_v30 }
 0x216   : > { %v406_v33 = vmul.f32 %v949_v31, %v949_v31  ;;  %v387_v34 = vmul.f32 %v952_v32, %v952_v32 }
 0x217   : > { %v422_v35 = vpop.permute.xlu1 %421 }
 0x218   : > { %v408_v36 = vsel %vm407_vm3, %v406_v33, 0.0  ;;  %v389_v37 = vsel %vm388_vm4, %v387_v34, 0.0  ;;  %v959_v38 = vsub.f32 %v935_v12, %v422_v35  ;;  %v445_v12 = vlaneseq }
 0x219   : > { %v409_v39 = vrot.slane %v408_v36, 4  ;;  %v390_v40 = vrot.slane %v389_v37, 4 }
 0x21a   : > { %v425_v41 = vmul.f32 %v959_v38, %v959_v38  ;;  %v446_v19 = vshrl.u32 %v445_v12, 7 }
 0x21b   : > { %v410_v42 = vadd.f32 %v409_v39, %v408_v36  ;;  %v391_v43 = vadd.f32 %v390_v40, %v389_v37 }
 0x21c   : > { %v427_v44 = vsel %vm426_vm5, %v425_v41, 0.0  ;;  %v447_v20 = vsub.s32 0, %v446_v19 }
 0x21d   : > { %v411_v45 = vrot.slane %v410_v42, 2  ;;  %v392_v46 = vrot.slane %v391_v43, 2  ;;  %v428_v47 = vrot.slane %v427_v44, 4 }
 0x21f   : > { %v429_v48 = vadd.f32 %v428_v47, %v427_v44  ;;  %v412_v49 = vadd.f32 %v411_v45, %v410_v42  ;;  %v393_v50 = vadd.f32 %v392_v46, %v391_v43 }
 0x221   : > { %v430_v51 = vrot.slane %v429_v48, 2  ;;  %v413_v52 = vrot.slane %v412_v49, 1  ;;  %v394_v53 = vrot.slane %v393_v50, 1 }
 0x223   : > { %v414_v54 = vadd.f32 %v413_v52, %v412_v49  ;;  %v395_v55 = vadd.f32 %v394_v53, %v393_v50  ;;  %v431_v56 = vadd.f32 %v430_v51, %v429_v48 }
 0x225   : > { %v415_v57 = vmul.f32 0.125, %v414_v54  ;;  %v396_v58 = vmul.f32 0.125, %v395_v55  ;;  %v432_v59 = vrot.slane %v431_v56, 1 }
 0x227   : > { %417 = vrot.lane.b32.xlu1 %v415_v57, %s798_s26  ;;  %398 = vrot.lane.b32.xlu0 %v396_v58, %s797_s25  ;;  %v433_v60 = vadd.f32 %v432_v59, %v431_v56 }
 0x229   : > { %v434_v61 = vmul.f32 0.125, %v433_v60 }
 0x22b   : > { %436 = vrot.lane.b32.xlu0 %v434_v61, %s796_s17  ;;  %470 = vrot.lane.b32.xlu1 %v597_v62, %s796_s17 }
 0x22f   : > { %483 = vrot.lane.b32.xlu1 %v597_v62, %s798_s26  ;;  %474 = vrot.lane.b32.xlu0 %v598_v63, %s796_s17 }
 0x299   : > { %v399_v10 = vpop.permute.xlu0 %398  ;;  %v418_v13 = vpop.permute.xlu1 %417 }
 0x29a   : > { %v401_v11 = vadd.f32 %v399_v10, %v380_v9 }
 0x29c   : > { %v420_v14 = vadd.f32 %v418_v13, %v401_v11 }
 0x29d   : > { %v437_v15 = vpop.permute.xlu0 %436  ;;  %v471_v23 = vpop.permute.xlu1 %470 }
 0x29e   : > { %v439_v16 = vadd.f32 %v437_v15, %v420_v14 }
 0x2a0   : > { %v440_v17 = vmul.f32 0.25, %v439_v16 }
 0x2a1   : > { %v475_v24 = vpop.permute.xlu0 %474  ;;  %v484_v25 = vpop.permute.xlu1 %483 }
 0x2a2   : > { %v441_v18 = vadd.f32 1e-05, %v440_v17 }
 0x2a4   : > { %686 = vrsqrt.f32 %v441_v18 }
 0x2b1   : > { %v687_v21 = vpop.eup %686 }
 0x2b2   : > { %v448_v22 = vrot.slane %v687_v21, %v447_v20 }
 0x2b4   : > { %479 = vrot.lane.b32.xlu0 %v448_v22, %s798_s26  ;;  %466 = vrot.lane.b32.xlu1 %v448_v22, %s796_s17  ;;  %v449_v26 = vmul.f32 %v448_v22, %v371_v0 }
 0x2b6   : > { %v456_v30 = vmul.f32 %v597_v62, %v449_v26 }
 0x2b8   : > { %492 = vrot.lane.b32.xlu0 %v448_v22, %s797_s25  ;;  %496 = vrot.lane.b32.xlu1 %v597_v62, %s797_s25  ;;  %v463_v40 = vadd.f32 %v598_v63, %v456_v30 }
 0x2bc   : > { %487 = vrot.lane.b32.xlu0 %v598_v63, %s798_s26  ;;  %500 = vrot.lane.b32.xlu1 %v598_v63, %s797_s25 }
 0x326   : > { %v480_v27 = vpop.permute.xlu0 %479  ;;  %v467_v28 = vpop.permute.xlu1 %466 }
 0x327   : > { %v469_v29 = vmul.f32 %v467_v28, %v952_v32  ;;  %v482_v33 = vmul.f32 %v480_v27, %v949_v31 }
 0x329   : > { %v473_v34 = vmul.f32 %v471_v23, %v469_v29  ;;  %v486_v42 = vmul.f32 %v484_v25, %v482_v33 }
 0x32a   : > { %v493_v35 = vpop.permute.xlu0 %492  ;;  %v497_v36 = vpop.permute.xlu1 %496 }
 0x32b   : > { %v477_v37 = vadd.f32 %v475_v24, %v473_v34  ;;  %v495_v39 = vmul.f32 %v493_v35, %v959_v38 }
 0x32d   : > { %v499_v41 = vmul.f32 %v497_v36, %v495_v39  ;;  %688 = vtanh.f32 %v477_v37 }
 0x32e   : > { %v488_v43 = vpop.permute.xlu0 %487  ;;  %v501_v44 = vpop.permute.xlu1 %500  ;;  %690 = vtanh.f32 %v463_v40 }
 0x32f   : > { %v490_v45 = vadd.f32 %v488_v43, %v486_v42  ;;  %v503_v46 = vadd.f32 %v501_v44, %v499_v41 }
 0x331   : > { %692 = vtanh.f32 %v490_v45 }
 0x332   : > { %694 = vtanh.f32 %v503_v46 }
 0x33a   : > { %v689_v31 = vpop.eup %688 }
 0x33b   : > { %v691_v32 = vpop.eup %690 }
 0x33c   : > { %v505_v38 = vsel %vm359_vm2, %v691_v32, %v689_v31 }
 0x33e   : > { %v693_v47 = vpop.eup %692 }
 0x33f   : > { %v695_v48 = vpop.eup %694  ;;  %v506_v49 = vsel %vm271_vm1, %v505_v38, %v693_v47 }
 0x340   : > { %v508_v50 = vsel %vm507_vm6, %v506_v49, %v695_v48 }
 0x341   : > { %509 = vst [vmem:[%s254_s9] sm:$0xff] %v508_v50 }
 0x342 PF: > { %p16_p7 = scmp.ge.s32.totalorder %s873_s28, 4   ;;  %s1023_s18 = smov %s780_s19 }
 0x343   : > { %s1024_s19 = smov %s784_s20  ;;  %s1025_s20 = smov %s890_s11 }
 0x344   : > { %s1026_s21 = smov %s873_s28  ;;  %18 = sbr.rel (!%p16_p7) target bundleno = 4 (0x4), region = 84 }
 0x349   :  { %529 = vsyncpa [#allocation3], 1 }
 0x34a   :  { %531 = vsyncpa [#allocation3 + $0x1], 1 }
 0x34b   :  { %532 = vsyncpa [#allocation5], 1 }

</bundles_post_ra>
